<compile_context>
chip_gen: v6e
topology: v6e:2x2x1
jax: 0.10.0
libtpu: 0.0.40
codegen_flags: <defaults>
</compile_context>

<pallas_src>
import functools

import jax
import jax.numpy as jnp
from jax.experimental import pallas as pl
from jax.experimental.pallas import tpu as pltpu

BN_EPS = 1e-5


def _round_up(n, m):
    return ((n + m - 1) // m) * m


def _decoder_fc_kernel(x_ref, p_ref, o_ref, *, d_in, lanes, offs):
    """x_ref: (B, d_in).  p_ref: (R, lanes) packed parameter slab.
    offs = (oW1, oV1, oW2, oV2, oW3, oB3) static row offsets, all % 8 == 0.
    Row layout of each V block: [0]=linear bias, [1]=BN gamma, [2]=BN beta.
    All padded columns/rows of the slab are zero, which keeps padded
    activation lanes exactly zero through the whole pipeline."""
    oW1, oV1, oW2, oV2, oW3, oB3 = offs
    x = x_ref[...].astype(jnp.float32)
    inv_b = 1.0 / x.shape[0]

    def relu_bn(h, ov):
        # ReLU
        h = jnp.maximum(h, 0.0)
        # Two-pass batch stats (training-mode, biased variance) — numerically
        # stable vs. E[h^2]-mean^2.
        mean = jnp.sum(h, axis=0, keepdims=True) * inv_b          # (1, L)
        c = h - mean
        var = jnp.sum(c * c, axis=0, keepdims=True) * inv_b       # (1, L)
        gamma = p_ref[ov + 1:ov + 2, :]
        beta = p_ref[ov + 2:ov + 3, :]
        scale = gamma * jax.lax.rsqrt(var + BN_EPS)               # EUP rsqrt
        # Single fused scale/shift; padded lanes: gamma=0 -> result 0.
        return c * scale + beta

    # ---- fc_in block 1: Linear(d_in, d_hidden) -> ReLU -> BatchNorm1d ----
    h1 = jnp.dot(x, p_ref[oW1:oW1 + d_in, :], preferred_element_type=jnp.float32)
    h1 = h1 + p_ref[oV1:oV1 + 1, :]
    h1 = relu_bn(h1, oV1)

    # ---- fc_in block 2: Linear(d_hidden, d_h2) -> ReLU -> BatchNorm1d ----
    h2 = jnp.dot(h1, p_ref[oW2:oW2 + lanes, :], preferred_element_type=jnp.float32)
    h2 = h2 + p_ref[oV2:oV2 + 1, :]
    h2 = relu_bn(h2, oV2)

    # ---- out: Linear(d_h2, d_out) ----  (lane-padded, unmasked full store)
    out = jnp.dot(h2, p_ref[oW3:oW3 + lanes, :], preferred_element_type=jnp.float32)
    out = out + p_ref[oB3:oB3 + 1, :]
    o_ref[...] = out.astype(o_ref.dtype)


def pack_params(p):
    """Pack every parameter into ONE zero-padded f32 slab (R, L):
      rows [oW1 : oW1+d_in]   : W1   (d_in,  d_hidden) lane-padded to L
      rows [oV1 : oV1+3]      : b1, gamma1, beta1
      rows [oW2 : oW2+L]      : W2   (d_hidden, d_h2)  padded to (L, L)
      rows [oV2 : oV2+3]      : b2, gamma2, beta2
      rows [oW3 : oW3+L]      : W3   (d_h2, d_out)     padded to (L, L)
      rows [oB3 : oB3+1]      : b3
    Every block's row extent is padded to a multiple of 8 so all in-kernel
    slices are sublane-tile aligned."""
    d_in, d_hidden = p["w1"].shape
    d_h2 = p["w2"].shape[1]
    d_out = p["w3"].shape[1]
    L = _round_up(max(d_hidden, d_h2, d_out), 128)

    def pad_lanes(a):
        return jnp.pad(a, ((0, 0), (0, L - a.shape[1])))

    def block(*arrs):
        blk = jnp.concatenate([pad_lanes(a) for a in arrs], axis=0)
        r = _round_up(blk.shape[0], 8)
        return jnp.pad(blk, ((0, r - blk.shape[0]), (0, 0)))

    w1_blk = block(p["w1"])                                         # (r(d_in), L)
    v1_blk = block(p["b1"], p["g1"], p["beta1"])                    # (8, L)
    w2_blk = block(jnp.pad(p["w2"], ((0, L - d_hidden), (0, 0))))   # (L, L)
    v2_blk = block(p["b2"], p["g2"], p["beta2"])                    # (8, L)
    w3_blk = block(jnp.pad(p["w3"], ((0, L - d_h2), (0, 0))))       # (L, L)
    b3_blk = block(p["b3"])                                         # (8, L)

    blocks = [w1_blk, v1_blk, w2_blk, v2_blk, w3_blk, b3_blk]
    offs, o = [], 0
    for b in blocks:
        offs.append(o)
        o += b.shape[0]
    slab = jnp.concatenate(blocks, axis=0).astype(jnp.float32)      # (R, L)
    dims = dict(d_in=d_in, d_hidden=d_hidden, d_h2=d_h2, d_out=d_out, L=L)
    return slab, tuple(offs), dims


def decoder_fc_forward(x, params):
    B, d_in = x.shape
    # B must be a multiple of the f32 sublane tile; padding the batch is not an
    # option because training-mode BN statistics depend on the true batch.
    assert B % 8 == 0, "batch size must be a multiple of 8 (f32 sublane tile)"

    slab, offs, dims = pack_params(params)
    L = dims["L"]
    d_out = dims["d_out"]

    kernel = functools.partial(_decoder_fc_kernel, d_in=d_in, lanes=L, offs=offs)

    flops = 2 * B * (d_in * dims["d_hidden"]
                     + dims["d_hidden"] * dims["d_h2"]
                     + dims["d_h2"] * d_out)
    bytes_accessed = 4 * (x.size + slab.size + B * L)

    vmem = pl.BlockSpec(memory_space=pltpu.MemorySpace.VMEM)
    out_pad = pl.pallas_call(
        kernel,
        out_shape=jax.ShapeDtypeStruct((B, L), jnp.float32),
        in_specs=[vmem, vmem],          # 2 input DMAs: x + packed slab
        out_specs=vmem,
        compiler_params=pltpu.CompilerParams(vmem_limit_bytes=32 * 1024 * 1024),
        cost_estimate=pl.CostEstimate(
            flops=flops,
            transcendentals=2 * (dims["d_hidden"] + dims["d_h2"]),
            bytes_accessed=bytes_accessed,
        ),
    )(x, slab)
    # Slice the lane-padded output back to the logical d_out outside the kernel.
    return out_pad[:, :d_out]


def init_params(key, d_in, d_hidden, d_out):
    """Deterministic synthetic parameters (Linear weights stored [in, out])."""
    ks = jax.random.split(key, 8)
    d_h2 = d_hidden // 2

    def lin(kw, kb, din, dout):
        bound = 1.0 / jnp.sqrt(din)
        w = jax.random.uniform(kw, (din, dout), jnp.float32, -bound, bound)
        b = jax.random.uniform(kb, (1, dout), jnp.float32, -bound, bound)
        return w, b

    w1, b1 = lin(ks[0], ks[1], d_in, d_hidden)
    w2, b2 = lin(ks[2], ks[3], d_hidden, d_h2)
    w3, b3 = lin(ks[4], ks[5], d_h2, d_out)
    # BatchNorm affine params (PyTorch init: gamma=1, beta=0) — gamma perturbed
    # slightly so the BN path is exercised non-trivially but deterministically.
    g1 = jnp.ones((1, d_hidden), jnp.float32) + 0.1 * jax.random.normal(ks[6], (1, d_hidden))
    beta1 = jnp.zeros((1, d_hidden), jnp.float32)
    g2 = jnp.ones((1, d_h2), jnp.float32) + 0.1 * jax.random.normal(ks[7], (1, d_h2))
    beta2 = jnp.zeros((1, d_h2), jnp.float32)
    return dict(w1=w1, b1=b1, g1=g1, beta1=beta1,
                w2=w2, b2=b2, g2=g2, beta2=beta2,
                w3=w3, b3=b3)


def reference_forward(x, p):
    """Pure-JAX reference mirroring the PyTorch forward (training-mode BN)."""
    h = jnp.maximum(x @ p["w1"] + p["b1"], 0.0)
    m = h.mean(0, keepdims=True)
    v = ((h - m) ** 2).mean(0, keepdims=True)
    h = p["g1"] * (h - m) / jnp.sqrt(v + BN_EPS) + p["beta1"]
    h = jnp.maximum(h @ p["w2"] + p["b2"], 0.0)
    m = h.mean(0, keepdims=True)
    v = ((h - m) ** 2).mean(0, keepdims=True)
    h = p["g2"] * (h - m) / jnp.sqrt(v + BN_EPS) + p["beta2"]
    return h @ p["w3"] + p["b3"]


if __name__ == "__main__":
    d_in, d_hidden, d_out = 16, 32, 8
    batch = 8

    key = jax.random.PRNGKey(0)
    kx, kp = jax.random.split(key)
    x = jax.random.normal(kx, (batch, d_in), jnp.float32)
    params = init_params(kp, d_in, d_hidden, d_out)

    out = decoder_fc_forward(x, params)
    out = jax.block_until_ready(out)

    ref = reference_forward(x, params)
    assert out.shape == (batch, d_out)
    assert jnp.allclose(out, ref, atol=1e-4, rtol=1e-4), "mismatch vs JAX reference"

    print("KERNEL_OK")
</pallas_src>

<mosaic_0001>
module attributes {stable_mosaic.version = 11 : i64} {
  func.func @_decoder_fc_kernel(%arg0: memref<8x16xf32, #tpu.memory_space<vmem>>, %arg1: memref<296x128xf32, #tpu.memory_space<vmem>>, %arg2: memref<8x128xf32, #tpu.memory_space<vmem>>) attributes {dimension_semantics = [], scalar_prefetch = 0 : i64, scratch_operands = 0 : i64, tpu.core_type = #tpu.core_type<tc>} {
    %c0 = arith.constant 0 : index
    %c0_0 = arith.constant 0 : index
    %0 = vector.load %arg0[%c0, %c0_0] : memref<8x16xf32, #tpu.memory_space<vmem>>, vector<8x16xf32>
    %c0_1 = arith.constant 0 : index
    %c0_2 = arith.constant 0 : index
    %1 = vector.load %arg1[%c0_1, %c0_2] : memref<296x128xf32, #tpu.memory_space<vmem>>, vector<16x128xf32>
    %cst = arith.constant dense<0.000000e+00> : vector<8x128xf32>
    %2 = tpu.matmul %0, %1, %cst {dimension_numbers = #tpu.dot_dimension_numbers<[1], [0], [0], [1], [0, 0, 1, 1], [], []>} : vector<8x16xf32>, vector<16x128xf32>, vector<8x128xf32> -> vector<8x128xf32>
    %c16 = arith.constant 16 : index
    %c0_3 = arith.constant 0 : index
    %3 = vector.load %arg1[%c16, %c0_3] : memref<296x128xf32, #tpu.memory_space<vmem>>, vector<1x128xf32>
    %4 = vector.broadcast %3 : vector<1x128xf32> to vector<8x128xf32>
    %5 = arith.addf %2, %4 : vector<8x128xf32>
    %cst_4 = arith.constant 0.000000e+00 : f32
    %6 = vector.broadcast %cst_4 : f32 to vector<8x128xf32>
    %7 = arith.maximumf %5, %6 : vector<8x128xf32>
    %cst_5 = arith.constant dense<0.000000e+00> : vector<128xf32>
    %8 = vector.multi_reduction <add>, %7, %cst_5 [0] : vector<8x128xf32> to vector<128xf32>
    %9 = vector.shape_cast %8 : vector<128xf32> to vector<1x128xf32>
    %cst_6 = arith.constant 1.250000e-01 : f32
    %10 = vector.broadcast %cst_6 : f32 to vector<1x128xf32>
    %11 = arith.mulf %9, %10 : vector<1x128xf32>
    %12 = vector.broadcast %11 : vector<1x128xf32> to vector<8x128xf32>
    %13 = arith.subf %7, %12 : vector<8x128xf32>
    %14 = arith.mulf %13, %13 : vector<8x128xf32>
    %cst_7 = arith.constant dense<0.000000e+00> : vector<128xf32>
    %15 = vector.multi_reduction <add>, %14, %cst_7 [0] : vector<8x128xf32> to vector<128xf32>
    %16 = vector.shape_cast %15 : vector<128xf32> to vector<1x128xf32>
    %cst_8 = arith.constant 1.250000e-01 : f32
    %17 = vector.broadcast %cst_8 : f32 to vector<1x128xf32>
    %18 = arith.mulf %16, %17 : vector<1x128xf32>
    %c17 = arith.constant 17 : index
    %c0_9 = arith.constant 0 : index
    %19 = vector.load %arg1[%c17, %c0_9] : memref<296x128xf32, #tpu.memory_space<vmem>>, vector<1x128xf32>
    %c18 = arith.constant 18 : index
    %c0_10 = arith.constant 0 : index
    %20 = vector.load %arg1[%c18, %c0_10] : memref<296x128xf32, #tpu.memory_space<vmem>>, vector<1x128xf32>
    %cst_11 = arith.constant 9.99999974E-6 : f32
    %21 = vector.broadcast %cst_11 : f32 to vector<1x128xf32>
    %22 = arith.addf %18, %21 : vector<1x128xf32>
    %23 = math.rsqrt %22 : vector<1x128xf32>
    %24 = arith.mulf %19, %23 : vector<1x128xf32>
    %25 = vector.broadcast %24 : vector<1x128xf32> to vector<8x128xf32>
    %26 = arith.mulf %13, %25 : vector<8x128xf32>
    %27 = vector.broadcast %20 : vector<1x128xf32> to vector<8x128xf32>
    %28 = arith.addf %26, %27 : vector<8x128xf32>
    %c24 = arith.constant 24 : index
    %c0_12 = arith.constant 0 : index
    %29 = vector.load %arg1[%c24, %c0_12] : memref<296x128xf32, #tpu.memory_space<vmem>>, vector<128x128xf32>
    %cst_13 = arith.constant dense<0.000000e+00> : vector<8x128xf32>
    %30 = tpu.matmul %28, %29, %cst_13 {dimension_numbers = #tpu.dot_dimension_numbers<[1], [0], [0], [1], [0, 0, 1, 1], [], []>} : vector<8x128xf32>, vector<128x128xf32>, vector<8x128xf32> -> vector<8x128xf32>
    %c152 = arith.constant 152 : index
    %c0_14 = arith.constant 0 : index
    %31 = vector.load %arg1[%c152, %c0_14] : memref<296x128xf32, #tpu.memory_space<vmem>>, vector<1x128xf32>
    %32 = vector.broadcast %31 : vector<1x128xf32> to vector<8x128xf32>
    %33 = arith.addf %30, %32 : vector<8x128xf32>
    %cst_15 = arith.constant 0.000000e+00 : f32
    %34 = vector.broadcast %cst_15 : f32 to vector<8x128xf32>
    %35 = arith.maximumf %33, %34 : vector<8x128xf32>
    %cst_16 = arith.constant dense<0.000000e+00> : vector<128xf32>
    %36 = vector.multi_reduction <add>, %35, %cst_16 [0] : vector<8x128xf32> to vector<128xf32>
    %37 = vector.shape_cast %36 : vector<128xf32> to vector<1x128xf32>
    %cst_17 = arith.constant 1.250000e-01 : f32
    %38 = vector.broadcast %cst_17 : f32 to vector<1x128xf32>
    %39 = arith.mulf %37, %38 : vector<1x128xf32>
    %40 = vector.broadcast %39 : vector<1x128xf32> to vector<8x128xf32>
    %41 = arith.subf %35, %40 : vector<8x128xf32>
    %42 = arith.mulf %41, %41 : vector<8x128xf32>
    %cst_18 = arith.constant dense<0.000000e+00> : vector<128xf32>
    %43 = vector.multi_reduction <add>, %42, %cst_18 [0] : vector<8x128xf32> to vector<128xf32>
    %44 = vector.shape_cast %43 : vector<128xf32> to vector<1x128xf32>
    %cst_19 = arith.constant 1.250000e-01 : f32
    %45 = vector.broadcast %cst_19 : f32 to vector<1x128xf32>
    %46 = arith.mulf %44, %45 : vector<1x128xf32>
    %c153 = arith.constant 153 : index
    %c0_20 = arith.constant 0 : index
    %47 = vector.load %arg1[%c153, %c0_20] : memref<296x128xf32, #tpu.memory_space<vmem>>, vector<1x128xf32>
    %c154 = arith.constant 154 : index
    %c0_21 = arith.constant 0 : index
    %48 = vector.load %arg1[%c154, %c0_21] : memref<296x128xf32, #tpu.memory_space<vmem>>, vector<1x128xf32>
    %cst_22 = arith.constant 9.99999974E-6 : f32
    %49 = vector.broadcast %cst_22 : f32 to vector<1x128xf32>
    %50 = arith.addf %46, %49 : vector<1x128xf32>
    %51 = math.rsqrt %50 : vector<1x128xf32>
    %52 = arith.mulf %47, %51 : vector<1x128xf32>
    %53 = vector.broadcast %52 : vector<1x128xf32> to vector<8x128xf32>
    %54 = arith.mulf %41, %53 : vector<8x128xf32>
    %55 = vector.broadcast %48 : vector<1x128xf32> to vector<8x128xf32>
    %56 = arith.addf %54, %55 : vector<8x128xf32>
    %c160 = arith.constant 160 : index
    %c0_23 = arith.constant 0 : index
    %57 = vector.load %arg1[%c160, %c0_23] : memref<296x128xf32, #tpu.memory_space<vmem>>, vector<128x128xf32>
    %cst_24 = arith.constant dense<0.000000e+00> : vector<8x128xf32>
    %58 = tpu.matmul %56, %57, %cst_24 {dimension_numbers = #tpu.dot_dimension_numbers<[1], [0], [0], [1], [0, 0, 1, 1], [], []>} : vector<8x128xf32>, vector<128x128xf32>, vector<8x128xf32> -> vector<8x128xf32>
    %c288 = arith.constant 288 : index
    %c0_25 = arith.constant 0 : index
    %59 = vector.load %arg1[%c288, %c0_25] : memref<296x128xf32, #tpu.memory_space<vmem>>, vector<1x128xf32>
    %60 = vector.broadcast %59 : vector<1x128xf32> to vector<8x128xf32>
    %61 = arith.addf %58, %60 : vector<8x128xf32>
    %c0_26 = arith.constant 0 : index
    %c0_27 = arith.constant 0 : index
    %62 = vector.load %arg2[%c0_26, %c0_27] : memref<8x128xf32, #tpu.memory_space<vmem>>, vector<8x128xf32>
    tpu.vector_store %arg2[%c0_26, %c0_27], %61 {strides = array<i32>} : memref<8x128xf32, #tpu.memory_space<vmem>>, vector<8x128xf32>,
    return
  }
}

</mosaic_0001>

<bundles_post_ra>
// kernel: tpu_custom_call.1
= control target key start
LH: loop header
LB: loop body
LE: loop exit
PB: predicated region body
PF: predicated region fallthrough
CT: control target
= control target key end

     0   :  { %7 = vsyncpa [#allocation3], 0  ;;  %s655_s0 = inlined_call_operand.hbm [shape: f32[8,16], index: 0, kind: input, shape index: {}]   ;;  %s656_s1 = inlined_call_operand.hbm [shape: f32[296,128], index: 1, kind: input, shape index: {}]   ;;  %s657_s2 = inlined_call_operand.hbm [shape: f32[8,128], index: 2, kind: output, shape index: {}]  }
   0x1   :  { %8 = vsyncpa [#allocation6], 0 }
   0x2   :  { %9 = vsyncpa [#allocation4], 0  ;;  %s580_s9 = smov [#allocation2]   ;;  %s581_s11 = smov [#allocation5]  }
   0x3   :  { %s16_s10 = sshll.u32 %s580_s9, 4  ;;  %s25_s12 = sshll.u32 %s581_s11, 4  ;;  %s17_s10 = int_to_ptr.vmem [resolvable:$true] %s16_s10  ;;  %s26_s12 = int_to_ptr.vmem [resolvable:$true] %s25_s12 }
   0x4   :  { %s522_s13 = scalar_lea.vmem %s17_s10, 128  ;;  %p527_p1 = scmp.lt.s32.totalorder %s17_s10, %s17_s10 }
   0x5   :  { %p523_p0 = scmp.ne.s32.totalorder %s17_s10, %s522_s13  ;;  %p528_p2 = scmp.lt.s32.totalorder %s522_s13, %s522_s13 }
   0x7   :  { %p529_p3 = por %p528_p2, %p527_p1 }
   0x9   :  { %p530_p4 = pnand %p529_p3, %p523_p0 }
   0xb   :  { %533 = shalt.err (!%p530_p4)
}
   0xc   :  { %19 = dma.hbm_to_vmem [thread:$0]  %s655_s0, 128, %s17_s10, [#allocation3]  }
   0xd   :  { %s542_s16 = scalar_lea.vmem %s26_s12, 4736  ;;  %p547_p6 = scmp.lt.s32.totalorder %s26_s12, %s26_s12 }
   0xe   :  { %p543_p5 = scmp.ne.s32.totalorder %s26_s12, %s542_s16  ;;  %p548_p7 = scmp.lt.s32.totalorder %s542_s16, %s542_s16 }
  0x10   :  { %p549_p8 = por %p548_p7, %p547_p6 }
  0x12   :  { %p550_p9 = pnand %p549_p8, %p543_p5 }
  0x14   :  { %553 = shalt.err (!%p550_p9)
}
  0x15   :  { %s582_s17 = smov 128   ;;  %s583_s18 = smov 8  }
  0x16   :  { %31 = dma.hbm_to_vmem [thread:$0]  %s656_s1, 4736, %s26_s12, [#allocation6], %s582_s17, %s582_s17, %s583_s18  }
  0x17   :  { %574 = dma.done.wait [#allocation3], 128  }
  0x18   :  { %575 = vsyncadd [#allocation3], 4294967168 }
  0x19   :  { %576 = dma.done.wait [#allocation6], 4736  }
  0x1a   :  { %577 = vsyncadd [#allocation6], 4294962560  ;;  %v584_v0 = vmov 0.0   ;;  %vm585_vm0 = vmmov 0   ;;  %v40_v1 = vld [vmem:[#allocation5 + $0x8] sm:$0xff]  ;;  %v39_v2 = vld [vmem:[#allocation5] sm:$0xff]  ;;  %v142_v42 = vlaneseq }
  0x1b   :  { %426 = vmatprep.subr.mxu0 %v584_v0  ;;  %430 = vmatprep.mubr.msk.f32.mxu0 %vm585_vm0, %v584_v0  ;;  %v38_v3 = vld [vmem:[#allocation2] sm:$0xff]  ;;  %vm46_vm1 = vcmask 130048   ;;  %v167_v4 = vld [vmem:[#allocation5 + $0x90] sm:$0xff]  ;;  %v166_v5 = vld [vmem:[#allocation5 + $0x88] sm:$0xff]  ;;  %s586_s0 = smov [#allocation7]  }
  0x1c   :  { %433 = vmatprep.subr.mxu1 %v584_v0  ;;  %465 = vmatprep.mubr.msk.f32.mxu1 %vm585_vm0, %v584_v0  ;;  %v165_v6 = vld [vmem:[#allocation5 + $0x80] sm:$0xff]  ;;  %v164_v7 = vld [vmem:[#allocation5 + $0x78] sm:$0xff]  ;;  %v163_v8 = vld [vmem:[#allocation5 + $0x70] sm:$0xff]  ;;  %v630_v43 = vshrl.u32 %v142_v42, 7  ;;  %s373_s1 = sshll.u32 %s586_s0, 4  ;;  %s374_s1 = int_to_ptr.vmem [resolvable:$true] %s373_s1 }
  0x1d   :  { %427 = vmatpush3.msra.mxu0 %v40_v1  ;;  %434 = vmatpush3.msra.mxu1 %v167_v4  ;;  %v162_v9 = vld [vmem:[#allocation5 + $0x68] sm:$0xff]  ;;  %v161_v10 = vld [vmem:[#allocation5 + $0x60] sm:$0xff]  ;;  %v160_v11 = vld [vmem:[#allocation5 + $0x58] sm:$0xff]  ;;  %s554_s21 = scalar_lea.vmem %s374_s1, 128  ;;  %p559_p11 = scmp.lt.s32.totalorder %s374_s1, %s374_s1 }
  0x1e   :  { %428 = vmatprep.subr.mxu0 %v584_v0  ;;  %435 = vmatprep.subr.mxu1 %v584_v0  ;;  %v159_v12 = vld [vmem:[#allocation5 + $0x50] sm:$0xff]  ;;  %v158_v13 = vld [vmem:[#allocation5 + $0x48] sm:$0xff]  ;;  %v157_v14 = vld [vmem:[#allocation5 + $0x40] sm:$0xff]  ;;  %v144_v45 = vsub.s32 0, %v630_v43  ;;  %p555_p10 = scmp.ne.s32.totalorder %s374_s1, %s554_s21  ;;  %p560_p12 = scmp.lt.s32.totalorder %s554_s21, %s554_s21 }
  0x1f   :  { %429 = vmatpush3.msra.mxu0 %v39_v2  ;;  %436 = vmatpush3.msra.mxu1 %v166_v5  ;;  %v156_v15 = vld [vmem:[#allocation5 + $0x38] sm:$0xff]  ;;  %v155_v16 = vld [vmem:[#allocation5 + $0x30] sm:$0xff]  ;;  %v154_v17 = vld [vmem:[#allocation5 + $0x28] sm:$0xff] }
  0x20   :  { %431 = vmatmul.mubr.msk.f32.vlgmr.msra.gmra.mxu0 %vm46_vm1, %v38_v3  ;;  %468 = vmatprep.subr.mxu0 %v584_v0  ;;  %v153_v18 = vld [vmem:[#allocation5 + $0x20] sm:$0xff]  ;;  %v152_v19 = vld [vmem:[#allocation5 + $0x18] sm:$0xff]  ;;  %v383_v20 = vld [vmem:[#allocation5 + $0x10] ss:$0 sm:$0xff]  ;;  %p561_p13 = por %p560_p12, %p559_p11 }
  0x21   :  { %500 = vmatprep.mubr.msk.f32.mxu0 %vm585_vm0, %v584_v0  ;;  %437 = vmatprep.subr.mxu1 %v584_v0  ;;  %v137_v44 = vld [vmem:[#allocation5 + $0x11] sm:$0x1]  ;;  %v385_v49 = vld [vmem:[#allocation5 + $0x12] ss:$0 sm:$0xff]  ;;  %v290_v52 = vld [vmem:[#allocation5 + $0x118] sm:$0xff] }
  0x22   :  { %438 = vmatpush3.msra.mxu1 %v165_v6  ;;  %469 = vmatpush3.msra.mxu0 %v290_v52  ;;  %v289_v53 = vld [vmem:[#allocation5 + $0x110] sm:$0xff]  ;;  %v288_v54 = vld [vmem:[#allocation5 + $0x108] sm:$0xff]  ;;  %v287_v55 = vld [vmem:[#allocation5 + $0x100] sm:$0xff]  ;;  %p562_p0 = pnand %p561_p13, %p555_p10 }
  0x23   :  { %439 = vmatprep.subr.mxu1 %v584_v0  ;;  %470 = vmatprep.subr.mxu0 %v584_v0  ;;  %v286_v56 = vld [vmem:[#allocation5 + $0xf8] sm:$0xff]  ;;  %v285_v57 = vld [vmem:[#allocation5 + $0xf0] sm:$0xff]  ;;  %v284_v58 = vld [vmem:[#allocation5 + $0xe8] sm:$0xff] }
  0x24   :  { %440 = vmatpush3.msra.mxu1 %v164_v7  ;;  %471 = vmatpush3.msra.mxu0 %v289_v53  ;;  %v283_v59 = vld [vmem:[#allocation5 + $0xe0] sm:$0xff]  ;;  %v282_v60 = vld [vmem:[#allocation5 + $0xd8] sm:$0xff]  ;;  %v281_v61 = vld [vmem:[#allocation5 + $0xd0] sm:$0xff] }
  0x25   :  { %441 = vmatprep.subr.mxu1 %v584_v0  ;;  %472 = vmatprep.subr.mxu0 %v584_v0  ;;  %v280_v62 = vld [vmem:[#allocation5 + $0xc8] sm:$0xff]  ;;  %v279_v63 = vld [vmem:[#allocation5 + $0xc0] sm:$0xff]  ;;  %v278_v1 = vld [vmem:[#allocation5 + $0xb8] sm:$0xff] }
  0x26   :  { %442 = vmatpush3.msra.mxu1 %v163_v8  ;;  %473 = vmatpush3.msra.mxu0 %v288_v54  ;;  %v277_v2 = vld [vmem:[#allocation5 + $0xb0] sm:$0xff]  ;;  %v276_v3 = vld [vmem:[#allocation5 + $0xa8] sm:$0xff]  ;;  %v275_v4 = vld [vmem:[#allocation5 + $0xa0] sm:$0xff] }
  0x27   :  { %443 = vmatprep.subr.mxu1 %v584_v0  ;;  %474 = vmatprep.subr.mxu0 %v584_v0  ;;  %v386_v5 = vld [vmem:[#allocation5 + $0x98] ss:$0 sm:$0xff] }
  0x28   :  { %444 = vmatpush3.msra.mxu1 %v162_v9  ;;  %475 = vmatpush3.msra.mxu0 %v287_v55 }
  0x29   :  { %445 = vmatprep.subr.mxu1 %v584_v0  ;;  %476 = vmatprep.subr.mxu0 %v584_v0 }
  0x2a   :  { %446 = vmatpush3.msra.mxu1 %v161_v10  ;;  %477 = vmatpush3.msra.mxu0 %v286_v56 }
  0x2b   :  { %447 = vmatprep.subr.mxu1 %v584_v0  ;;  %478 = vmatprep.subr.mxu0 %v584_v0 }
  0x2c   :  { %448 = vmatpush3.msra.mxu1 %v160_v11  ;;  %479 = vmatpush3.msra.mxu0 %v285_v57 }
  0x2d   :  { %449 = vmatprep.subr.mxu1 %v584_v0  ;;  %480 = vmatprep.subr.mxu0 %v584_v0 }
  0x2e   :  { %450 = vmatpush3.msra.mxu1 %v159_v12  ;;  %481 = vmatpush3.msra.mxu0 %v284_v58 }
  0x2f   :  { %451 = vmatprep.subr.mxu1 %v584_v0  ;;  %482 = vmatprep.subr.mxu0 %v584_v0 }
  0x30   :  { %452 = vmatpush3.msra.mxu1 %v158_v13  ;;  %483 = vmatpush3.msra.mxu0 %v283_v59 }
  0x31   :  { %453 = vmatprep.subr.mxu1 %v584_v0  ;;  %484 = vmatprep.subr.mxu0 %v584_v0 }
  0x32   :  { %454 = vmatpush3.msra.mxu1 %v157_v14  ;;  %485 = vmatpush3.msra.mxu0 %v282_v60 }
  0x33   :  { %455 = vmatprep.subr.mxu1 %v584_v0  ;;  %486 = vmatprep.subr.mxu0 %v584_v0 }
  0x34   :  { %456 = vmatpush3.msra.mxu1 %v156_v15  ;;  %487 = vmatpush3.msra.mxu0 %v281_v61 }
  0x35   :  { %457 = vmatprep.subr.mxu1 %v584_v0  ;;  %488 = vmatprep.subr.mxu0 %v584_v0 }
  0x36   :  { %458 = vmatpush3.msra.mxu1 %v155_v16  ;;  %489 = vmatpush3.msra.mxu0 %v280_v62 }
  0x37   :  { %459 = vmatprep.subr.mxu1 %v584_v0  ;;  %490 = vmatprep.subr.mxu0 %v584_v0 }
  0x38   :  { %460 = vmatpush3.msra.mxu1 %v154_v17  ;;  %491 = vmatpush3.msra.mxu0 %v279_v63 }
  0x39   :  { %461 = vmatprep.subr.mxu1 %v584_v0  ;;  %492 = vmatprep.subr.mxu0 %v584_v0 }
  0x3a   :  { %462 = vmatpush3.msra.mxu1 %v153_v18  ;;  %493 = vmatpush3.msra.mxu0 %v278_v1 }
  0x3b   :  { %463 = vmatprep.subr.mxu1 %v584_v0  ;;  %494 = vmatprep.subr.mxu0 %v584_v0 }
  0x3c   :  { %464 = vmatpush3.msra.mxu1 %v152_v19  ;;  %495 = vmatpush3.msra.mxu0 %v277_v2 }
  0x3d   :  { %496 = vmatprep.subr.mxu0 %v584_v0 }
  0x3e   :  { %497 = vmatpush3.msra.mxu0 %v276_v3 }
  0x3f   :  { %498 = vmatprep.subr.mxu0 %v584_v0 }
  0x40   :  { %499 = vmatpush3.msra.mxu0 %v275_v4 }
  0xe0   :  { %v116_v21 = vpop.f32.mrf.mxu0 }
  0xe1   :  { %v117_v22 = vadd.f32 %v383_v20, %v116_v21 }
  0xe2   :  { %v432_v23 = vpop.f32.mrf.mxu0 }
  0xe3   :  { %v120_v24 = vmax.f32 %v117_v22, 0.0 }
  0xe5   :  { %v121_v25 = vrot.slane %v120_v24, 4 }
  0xe7   :  { %v122_v26 = vadd.f32 %v121_v25, %v120_v24 }
  0xe9   :  { %v123_v27 = vrot.slane %v122_v26, 2 }
  0xeb   :  { %v124_v28 = vadd.f32 %v123_v27, %v122_v26  ;;  %v260_v26 = vld [vmem:[#allocation5 + $0x99] sm:$0x1] }
  0xed   :  { %v125_v29 = vrot.slane %v124_v28, 1 }
  0xef   :  { %v126_v30 = vadd.f32 %v125_v29, %v124_v28 }
  0xf1   :  { %v127_v31 = vmul.f32 0.125, %v126_v30  ;;  %v387_v30 = vld [vmem:[#allocation5 + $0x9a] ss:$0 sm:$0xff] }
  0xf3   :  { %v128_v32 = vsub.f32 %v120_v24, %v127_v31 }
  0xf5   :  { %v129_v33 = vmul.f32 %v128_v32, %v128_v32 }
  0xf7   :  { %v130_v34 = vrot.slane %v129_v33, 4 }
  0xf9   :  { %v131_v35 = vadd.f32 %v130_v34, %v129_v33  ;;  %v388_v33 = vld [vmem:[#allocation5 + $0x120] ss:$0 sm:$0xff] }
  0xfb   :  { %v132_v36 = vrot.slane %v131_v35, 2 }
  0xfd   :  { %v133_v37 = vadd.f32 %v132_v36, %v131_v35 }
  0xff   :  { %v134_v38 = vrot.slane %v133_v37, 1 }
 0x101   :  { %v135_v39 = vadd.f32 %v134_v38, %v133_v37 }
 0x103   :  { %v136_v40 = vmul.f32 0.125, %v135_v39 }
 0x105   :  { %v139_v41 = vadd.f32 1e-05, %v136_v40 }
 0x107   :  { %510 = vrsqrt.f32 %v139_v41 }
 0x114   :  { %v511_v46 = vpop.eup %510 }
 0x115   :  { %v141_v47 = vmul.f32 %v511_v46, %v137_v44 }
 0x117   :  { %v145_v48 = vrot.slane %v141_v47, %v144_v45 }
 0x119   :  { %v146_v50 = vmul.f32 %v145_v48, %v128_v32 }
 0x11b   :  { %v151_v51 = vadd.f32 %v385_v49, %v146_v50 }
 0x11d   :  { %466 = vmatmul.mubr.f32.vlgmr.msra.gmra.mxu1 %v151_v51 }
 0x1dd   :  { %v239_v6 = vpop.f32.mrf.mxu1 }
 0x1de   :  { %v240_v7 = vadd.f32 %v386_v5, %v239_v6 }
 0x1df   :  { %v467_v8 = vpop.f32.mrf.mxu1 }
 0x1e0   :  { %v243_v9 = vmax.f32 %v240_v7, 0.0 }
 0x1e2   :  { %v244_v10 = vrot.slane %v243_v9, 4 }
 0x1e4   :  { %v245_v11 = vadd.f32 %v244_v10, %v243_v9 }
 0x1e6   :  { %v246_v12 = vrot.slane %v245_v11, 2 }
 0x1e8   :  { %v247_v13 = vadd.f32 %v246_v12, %v245_v11 }
 0x1ea   :  { %v248_v14 = vrot.slane %v247_v13, 1 }
 0x1ec   :  { %v249_v15 = vadd.f32 %v248_v14, %v247_v13 }
 0x1ee   :  { %v250_v16 = vmul.f32 0.125, %v249_v15 }
 0x1f0   :  { %v251_v17 = vsub.f32 %v243_v9, %v250_v16 }
 0x1f2   :  { %v252_v18 = vmul.f32 %v251_v17, %v251_v17 }
 0x1f4   :  { %v253_v19 = vrot.slane %v252_v18, 4 }
 0x1f6   :  { %v254_v20 = vadd.f32 %v253_v19, %v252_v18 }
 0x1f8   :  { %v255_v21 = vrot.slane %v254_v20, 2 }
 0x1fa   :  { %v256_v22 = vadd.f32 %v255_v21, %v254_v20 }
 0x1fc   :  { %v257_v0 = vrot.slane %v256_v22, 1 }
 0x1fe   :  { %v258_v23 = vadd.f32 %v257_v0, %v256_v22 }
 0x200   :  { %v259_v24 = vmul.f32 0.125, %v258_v23 }
 0x202   :  { %v262_v25 = vadd.f32 1e-05, %v259_v24 }
 0x204   :  { %512 = vrsqrt.f32 %v262_v25 }
 0x211   :  { %v513_v27 = vpop.eup %512 }
 0x212   :  { %v264_v28 = vmul.f32 %v513_v27, %v260_v26 }
 0x214   :  { %v268_v29 = vrot.slane %v264_v28, %v144_v45 }
 0x216   :  { %v269_v31 = vmul.f32 %v268_v29, %v251_v17 }
 0x218   :  { %v274_v32 = vadd.f32 %v387_v30, %v269_v31 }
 0x21a   :  { %501 = vmatmul.mubr.f32.vlgmr.msra.gmra.mxu0 %v274_v32 }
 0x2da   :  { %v362_v34 = vpop.f32.mrf.mxu0 }
 0x2db   :  { %v363_v35 = vadd.f32 %v388_v33, %v362_v34 }
 0x2dc   :  { %v502_v36 = vpop.f32.mrf.mxu0 }
 0x2dd   :  { %366 = vst [vmem:[#allocation7] sm:$0xff] %v363_v35 }
 0x2de   :  { %565 = shalt.err (!%p562_p0)
}
 0x2df   :  { %376 = dma.vmem_to_hbm [thread:$0]  %s374_s1, 128, %s657_s2, [#allocation4]  }
 0x2e0   :  { %578 = dma.done.wait [#allocation4], 128  }
 0x2e1   :  { %579 = vsyncadd [#allocation4], 4294967168 }
 0x2e2   :  { %380 = vsyncpa [#allocation3], 1 }
 0x2e3   :  { %381 = vsyncpa [#allocation6], 1 }
 0x2e4   :  { %382 = vsyncpa [#allocation4], 1 }

</bundles_post_ra>
